<compile_context>
chip_gen: v7x
topology: tpu7x:2x2x1
jax: 0.10.0
libtpu: 0.0.40
codegen_flags: <defaults>
</compile_context>

<pallas_src>
import math

import jax
import jax.numpy as jnp
from jax.experimental import pallas as pl
from jax.experimental.pallas import tpu as pltpu

_LANE = 128      # TPU lane width: pad feature dims to this for dense vregs / unmasked stores
_SUBLANE = 8     # TPU sublane width: batch tiles must be a multiple of this


def _round_up(x, m):
    return ((x + m - 1) // m) * m


def dqn_kernel(x_ref, w1_ref, w2_ref, w3_ref, b_ref, o_ref):
    """Fused forward pass: relu(x@W1+b1) -> relu(.@W2+b2) -> .@W3+b3 (all dims lane-padded)."""
    x = x_ref[...]
    b = b_ref[...]  # (8, 128): rows 0/1/2 are b1/b2/b3 (lane-padded), rest zeros
    h1 = jnp.dot(x, w1_ref[...], preferred_element_type=jnp.float32) + b[0:1, :]
    h1 = jnp.maximum(h1, 0.0)
    h2 = jnp.dot(h1, w2_ref[...], preferred_element_type=jnp.float32) + b[1:2, :]
    h2 = jnp.maximum(h2, 0.0)
    o_ref[...] = jnp.dot(h2, w3_ref[...], preferred_element_type=jnp.float32) + b[2:3, :]


def dqn_forward(x, params, *, batch_tile=512):
    """x: (B, state_dim) float32. params: dict of transposed weights/biases.

    Handles arbitrary B by padding the batch to a tile multiple, and pads hidden/action
    feature dims to 128 lanes inside the kernel path (sliced off before returning).
    """
    B, state_dim = x.shape
    w1, b1 = params["w1"], params["b1"]
    w2, b2 = params["w2"], params["b2"]
    w3, b3 = params["w3"], params["b3"]
    hidden = w1.shape[1]
    action_dim = w3.shape[1]

    # ---- lane-pad feature dims (hidden, action_dim) to 128 with zeros -------------------
    hid_p = _round_up(hidden, _LANE)
    act_p = _round_up(action_dim, _LANE)

    w1_p = jnp.pad(w1.astype(jnp.float32), ((0, 0), (0, hid_p - hidden)))
    w2_p = jnp.pad(w2.astype(jnp.float32), ((0, hid_p - hidden), (0, hid_p - hidden)))
    w3_p = jnp.pad(w3.astype(jnp.float32), ((0, hid_p - hidden), (0, act_p - action_dim)))

    # Stack the three biases into a single (8, max_lane) VMEM input (rows 3..7 are zeros).
    lane_w = max(hid_p, act_p)
    b_stack = jnp.zeros((_SUBLANE, lane_w), jnp.float32)
    b_stack = b_stack.at[0, :hidden].set(b1.reshape(-1).astype(jnp.float32))
    b_stack = b_stack.at[1, :hidden].set(b2.reshape(-1).astype(jnp.float32))
    b_stack = b_stack.at[2, :action_dim].set(b3.reshape(-1).astype(jnp.float32))

    # ---- pick batch tile and pad batch so the tile divides it ---------------------------
    tile = min(batch_tile, _round_up(B, _SUBLANE))
    tile = _round_up(tile, _SUBLANE)
    B_pad = _round_up(B, tile)
    x_p = x.astype(jnp.float32)
    if B_pad != B:
        x_p = jnp.pad(x_p, ((0, B_pad - B), (0, 0)))

    grid = (B_pad // tile,)

    # Batch is tiled across the grid; weights/biases are replicated to every tile.
    in_specs = [
        pl.BlockSpec((tile, state_dim),  lambda i: (i, 0)),   # x tile
        pl.BlockSpec((state_dim, hid_p), lambda i: (0, 0)),   # W1^T (lane-padded)
        pl.BlockSpec((hid_p, hid_p),     lambda i: (0, 0)),   # W2^T (lane-padded)
        pl.BlockSpec((hid_p, act_p),     lambda i: (0, 0)),   # W3^T (lane-padded)
        pl.BlockSpec((_SUBLANE, lane_w), lambda i: (0, 0)),   # stacked biases
    ]
    out_spec = pl.BlockSpec((tile, act_p), lambda i: (i, 0))

    out_padded = pl.pallas_call(
        dqn_kernel,
        out_shape=jax.ShapeDtypeStruct((B_pad, act_p), jnp.float32),
        grid=grid,
        in_specs=in_specs,
        out_specs=out_spec,
        compiler_params=pltpu.CompilerParams(
            dimension_semantics=("parallel",),
        ),
    )(x_p, w1_p, w2_p, w3_p, b_stack)

    return out_padded[:B, :action_dim]


def init_dqn_params(key, state_dim, action_dim, hidden=64):
    """Deterministic init mirroring torch.nn.Linear's default U(-1/sqrt(fan_in), 1/sqrt(fan_in)).

    Weights are stored transposed: (in_features, out_features). Biases stored as (1, out)."""
    keys = jax.random.split(key, 6)

    def linear(kw, kb, fan_in, fan_out):
        bound = 1.0 / math.sqrt(fan_in)
        w = jax.random.uniform(kw, (fan_in, fan_out), jnp.float32, -bound, bound)
        b = jax.random.uniform(kb, (1, fan_out), jnp.float32, -bound, bound)
        return w, b

    w1, b1 = linear(keys[0], keys[1], state_dim, hidden)
    w2, b2 = linear(keys[2], keys[3], hidden, hidden)
    w3, b3 = linear(keys[4], keys[5], hidden, action_dim)
    return {"w1": w1, "b1": b1, "w2": w2, "b2": b2, "w3": w3, "b3": b3}


def dqn_reference(x, p):
    """Pure-JAX reference of the PyTorch forward."""
    h1 = jnp.maximum(x @ p["w1"] + p["b1"], 0.0)
    h2 = jnp.maximum(h1 @ p["w2"] + p["b2"], 0.0)
    return h2 @ p["w3"] + p["b3"]


if __name__ == "__main__":
    key = jax.random.PRNGKey(0)
    k_param, k_x = jax.random.split(key)

    # Small deterministic example; batch intentionally NOT a multiple of 8 to exercise padding.
    batch, state_dim, action_dim = 10, 16, 4
    params = init_dqn_params(k_param, state_dim, action_dim, hidden=64)
    x = jax.random.normal(k_x, (batch, state_dim), dtype=jnp.float32)

    out = dqn_forward(x, params, batch_tile=512)
    out = jax.block_until_ready(out)

    ref = dqn_reference(x, params)
    assert out.shape == (batch, action_dim)
    assert jnp.allclose(out, ref, atol=1e-5, rtol=1e-5), "Pallas output mismatch vs reference"

    print("KERNEL_OK")
</pallas_src>

<mosaic_0001>
module attributes {stable_mosaic.version = 11 : i64} {
  func.func @dqn_kernel(%arg0: i32, %arg1: memref<16x16xf32, #tpu.memory_space<vmem>>, %arg2: memref<16x128xf32, #tpu.memory_space<vmem>>, %arg3: memref<128x128xf32, #tpu.memory_space<vmem>>, %arg4: memref<128x128xf32, #tpu.memory_space<vmem>>, %arg5: memref<8x128xf32, #tpu.memory_space<vmem>>, %arg6: memref<16x128xf32, #tpu.memory_space<vmem>>) attributes {dimension_semantics = [#tpu.dimension_semantics<parallel>], iteration_bounds = array<i64: 1>, scalar_prefetch = 0 : i64, scratch_operands = 0 : i64, tpu.core_type = #tpu.core_type<tc>, window_params = [{transform_indices = @transform_0, window_bounds = array<i64: 16, 16>}, {pipeline_mode = #tpu.pipeline_mode<synchronous>, transform_indices = @transform_1, window_bounds = array<i64: 16, 128>}, {pipeline_mode = #tpu.pipeline_mode<synchronous>, transform_indices = @transform_2, window_bounds = array<i64: 128, 128>}, {pipeline_mode = #tpu.pipeline_mode<synchronous>, transform_indices = @transform_3, window_bounds = array<i64: 128, 128>}, {pipeline_mode = #tpu.pipeline_mode<synchronous>, transform_indices = @transform_4, window_bounds = array<i64: 8, 128>}, {transform_indices = @transform_5, window_bounds = array<i64: 16, 128>}]} {
    %c0 = arith.constant 0 : index
    %c0_0 = arith.constant 0 : index
    %0 = vector.load %arg1[%c0, %c0_0] : memref<16x16xf32, #tpu.memory_space<vmem>>, vector<16x16xf32>
    %c0_1 = arith.constant 0 : index
    %c0_2 = arith.constant 0 : index
    %1 = vector.load %arg5[%c0_1, %c0_2] : memref<8x128xf32, #tpu.memory_space<vmem>>, vector<8x128xf32>
    %c0_3 = arith.constant 0 : index
    %c0_4 = arith.constant 0 : index
    %2 = vector.load %arg2[%c0_3, %c0_4] : memref<16x128xf32, #tpu.memory_space<vmem>>, vector<16x128xf32>
    %cst = arith.constant dense<0.000000e+00> : vector<16x128xf32>
    %3 = tpu.matmul %0, %2, %cst {dimension_numbers = #tpu.dot_dimension_numbers<[1], [0], [0], [1], [0, 0, 1, 1], [], []>} : vector<16x16xf32>, vector<16x128xf32>, vector<16x128xf32> -> vector<16x128xf32>
    %4 = vector.extract_strided_slice %1 {offsets = [0, 0], sizes = [1, 128], strides = [1, 1]} : vector<8x128xf32> to vector<1x128xf32>
    %5 = vector.broadcast %4 : vector<1x128xf32> to vector<16x128xf32>
    %6 = arith.addf %3, %5 : vector<16x128xf32>
    %cst_5 = arith.constant 0.000000e+00 : f32
    %7 = vector.broadcast %cst_5 : f32 to vector<16x128xf32>
    %8 = arith.maximumf %6, %7 : vector<16x128xf32>
    %c0_6 = arith.constant 0 : index
    %c0_7 = arith.constant 0 : index
    %9 = vector.load %arg3[%c0_6, %c0_7] : memref<128x128xf32, #tpu.memory_space<vmem>>, vector<128x128xf32>
    %cst_8 = arith.constant dense<0.000000e+00> : vector<16x128xf32>
    %10 = tpu.matmul %8, %9, %cst_8 {dimension_numbers = #tpu.dot_dimension_numbers<[1], [0], [0], [1], [0, 0, 1, 1], [], []>} : vector<16x128xf32>, vector<128x128xf32>, vector<16x128xf32> -> vector<16x128xf32>
    %11 = vector.extract_strided_slice %1 {offsets = [1, 0], sizes = [1, 128], strides = [1, 1]} : vector<8x128xf32> to vector<1x128xf32>
    %12 = vector.broadcast %11 : vector<1x128xf32> to vector<16x128xf32>
    %13 = arith.addf %10, %12 : vector<16x128xf32>
    %cst_9 = arith.constant 0.000000e+00 : f32
    %14 = vector.broadcast %cst_9 : f32 to vector<16x128xf32>
    %15 = arith.maximumf %13, %14 : vector<16x128xf32>
    %c0_10 = arith.constant 0 : index
    %c0_11 = arith.constant 0 : index
    %16 = vector.load %arg4[%c0_10, %c0_11] : memref<128x128xf32, #tpu.memory_space<vmem>>, vector<128x128xf32>
    %cst_12 = arith.constant dense<0.000000e+00> : vector<16x128xf32>
    %17 = tpu.matmul %15, %16, %cst_12 {dimension_numbers = #tpu.dot_dimension_numbers<[1], [0], [0], [1], [0, 0, 1, 1], [], []>} : vector<16x128xf32>, vector<128x128xf32>, vector<16x128xf32> -> vector<16x128xf32>
    %18 = vector.extract_strided_slice %1 {offsets = [2, 0], sizes = [1, 128], strides = [1, 1]} : vector<8x128xf32> to vector<1x128xf32>
    %19 = vector.broadcast %18 : vector<1x128xf32> to vector<16x128xf32>
    %20 = arith.addf %17, %19 : vector<16x128xf32>
    %c0_13 = arith.constant 0 : index
    %c0_14 = arith.constant 0 : index
    %21 = vector.load %arg6[%c0_13, %c0_14] : memref<16x128xf32, #tpu.memory_space<vmem>>, vector<16x128xf32>
    tpu.vector_store %arg6[%c0_13, %c0_14], %20 {strides = array<i32>} : memref<16x128xf32, #tpu.memory_space<vmem>>, vector<16x128xf32>,
    return
  }
  func.func @transform_0(%arg0: i32) -> (i32, i32) {
    %c0_i32 = arith.constant 0 : i32
    %c0_i32_0 = arith.constant 0 : i32
    return %arg0, %c0_i32 : i32, i32
  }
  func.func @transform_1(%arg0: i32) -> (i32, i32) {
    %c0_i32 = arith.constant 0 : i32
    %c0_i32_0 = arith.constant 0 : i32
    %c0_i32_1 = arith.constant 0 : i32
    return %c0_i32, %c0_i32_0 : i32, i32
  }
  func.func @transform_2(%arg0: i32) -> (i32, i32) {
    %c0_i32 = arith.constant 0 : i32
    %c0_i32_0 = arith.constant 0 : i32
    %c0_i32_1 = arith.constant 0 : i32
    return %c0_i32, %c0_i32_0 : i32, i32
  }
  func.func @transform_3(%arg0: i32) -> (i32, i32) {
    %c0_i32 = arith.constant 0 : i32
    %c0_i32_0 = arith.constant 0 : i32
    %c0_i32_1 = arith.constant 0 : i32
    return %c0_i32, %c0_i32_0 : i32, i32
  }
  func.func @transform_4(%arg0: i32) -> (i32, i32) {
    %c0_i32 = arith.constant 0 : i32
    %c0_i32_0 = arith.constant 0 : i32
    %c0_i32_1 = arith.constant 0 : i32
    return %c0_i32, %c0_i32_0 : i32, i32
  }
  func.func @transform_5(%arg0: i32) -> (i32, i32) {
    %c0_i32 = arith.constant 0 : i32
    %c0_i32_0 = arith.constant 0 : i32
    return %arg0, %c0_i32 : i32, i32
  }
}

</mosaic_0001>

<bundles_post_ra>
// kernel: tpu_custom_call.1
= control target key start
LH: loop header
LB: loop body
LE: loop exit
PB: predicated region body
PF: predicated region fallthrough
CT: control target
= control target key end

     0   :  { %10 = vsyncpa [#allocation3], 0  ;;  %s825_s0 = inlined_call_operand.hbm [shape: f32[16,16], index: 0, kind: input, shape index: {}]   ;;  %s826_s1 = inlined_call_operand.hbm [shape: f32[16,128], index: 1, kind: input, shape index: {}]   ;;  %s827_s2 = inlined_call_operand.hbm [shape: f32[128,128], index: 2, kind: input, shape index: {}]   ;;  %s828_s3 = inlined_call_operand.hbm [shape: f32[128,128], index: 3, kind: input, shape index: {}]   ;;  %s829_s4 = inlined_call_operand.vmem [shape: f32[8,128], index: 4, kind: input, shape index: {}]   ;;  %s830_s5 = inlined_call_operand.hbm [shape: f32[16,128], index: 5, kind: output, shape index: {}]  }
   0x1   :  { %11 = vsyncpa [#allocation6], 0 }
   0x2   :  { %12 = vsyncpa [#allocation9], 0 }
   0x3   :  { %13 = vsyncpa [#allocation4], 0  ;;  %s694_s18 = smov [#allocation5]   ;;  %s695_s20 = smov [#allocation2]  }
   0x4   :  { %s31_s19 = sshll.u32 %s694_s18, 4  ;;  %s19_s21 = sshll.u32 %s695_s20, 4  ;;  %s32_s19 = int_to_ptr.vmem [resolvable:$true] %s31_s19  ;;  %s731_s21 = int_to_ptr.vmem [resolvable:$true] %s19_s21 }
   0x5   :  { %s576_s24 = scalar_lea.hbm %s826_s1, 256 }
   0x6   :  { %p577_p0 = scmp.ne.s32.totalorder %s826_s1, %s576_s24  ;;  %p580_p1 = scmp.lt.u32.totalorder %s576_s24, %s826_s1 }
   0x8   :  { %p582_p2 = pnand %p580_p1, %p577_p0 }
   0xa   :  { %585 = shalt.err (!%p582_p2)
}
   0xb   :  { %s586_s29 = scalar_lea.vmem %s32_s19, 256  ;;  %p591_p4 = scmp.lt.s32.totalorder %s32_s19, %s32_s19 }
   0xc   :  { %p587_p3 = scmp.ne.s32.totalorder %s32_s19, %s586_s29  ;;  %p592_p5 = scmp.lt.s32.totalorder %s586_s29, %s586_s29 }
   0xe   :  { %p593_p6 = por %p592_p5, %p591_p4 }
  0x10   :  { %p594_p7 = pnand %p593_p6, %p587_p3 }
  0x12   :  { %597 = shalt.err (!%p594_p7)
}
  0x13   :  { %s696_s30 = smov 128   ;;  %s697_s6 = smov 8  }
  0x14   :  { %37 = dma.hbm_to_vmem [thread:$0]  %s826_s1, 256, %s32_s19, [#allocation6], %s696_s30, %s696_s30, %s697_s6  }
  0x15   :  { %s598_s11 = scalar_lea.hbm %s825_s0, 256 }
  0x16   :  { %p599_p8 = scmp.ne.s32.totalorder %s825_s0, %s598_s11  ;;  %p602_p9 = scmp.lt.u32.totalorder %s598_s11, %s825_s0 }
  0x18   :  { %p604_p10 = pnand %p602_p9, %p599_p8 }
  0x1a   :  { %607 = shalt.err (!%p604_p10)
}
  0x1b   :  { %s608_s16 = scalar_lea.vmem %s731_s21, 256  ;;  %p613_p12 = scmp.lt.s32.totalorder %s731_s21, %s731_s21 }
  0x1c   :  { %p609_p11 = scmp.ne.s32.totalorder %s731_s21, %s608_s16  ;;  %p614_p13 = scmp.lt.s32.totalorder %s608_s16, %s608_s16 }
  0x1e   :  { %p615_p0 = por %p614_p13, %p613_p12 }
  0x20   :  { %p616_p1 = pnand %p615_p0, %p609_p11 }
  0x22   :  { %619 = shalt.err (!%p616_p1)
}
  0x23   :  { %25 = dma.hbm_to_vmem [thread:$0]  %s825_s0, 256, %s731_s21, [#allocation3], %s696_s30, %s696_s30, %s697_s6  }
  0x24   :  { %s698_s18 = smov [#allocation7]   ;;  %s699_s20 = smov [#allocation8]  }
  0x25   :  { %s43_s19 = sshll.u32 %s698_s18, 4  ;;  %s55_s22 = sshll.u32 %s699_s20, 4  ;;  %s44_s19 = int_to_ptr.vmem [resolvable:$true] %s43_s19  ;;  %s768_s22 = int_to_ptr.vmem [resolvable:$true] %s55_s22 }
  0x26   :  { %s620_s25 = scalar_lea.hbm %s827_s2, 2048 }
  0x27   :  { %p621_p2 = scmp.ne.s32.totalorder %s827_s2, %s620_s25  ;;  %p624_p3 = scmp.lt.u32.totalorder %s620_s25, %s827_s2 }
  0x29   :  { %p626_p4 = pnand %p624_p3, %p621_p2 }
  0x2b   :  { %629 = shalt.err (!%p626_p4)
}
  0x2c   :  { %s630_s0 = scalar_lea.vmem %s44_s19, 2048  ;;  %p635_p6 = scmp.lt.s32.totalorder %s44_s19, %s44_s19 }
  0x2d   :  { %p631_p5 = scmp.ne.s32.totalorder %s44_s19, %s630_s0  ;;  %p636_p7 = scmp.lt.s32.totalorder %s630_s0, %s630_s0 }
  0x2f   :  { %p637_p8 = por %p636_p7, %p635_p6 }
  0x31   :  { %p638_p9 = pnand %p637_p8, %p631_p5 }
  0x33   :  { %641 = shalt.err (!%p638_p9)
}
  0x34   :  { %49 = dma.hbm_to_vmem [thread:$0]  %s827_s2, 2048, %s44_s19, [#allocation6], %s696_s30, %s696_s30, %s697_s6  }
  0x35   :  { %s642_s10 = scalar_lea.hbm %s828_s3, 2048 }
  0x36   :  { %p643_p10 = scmp.ne.s32.totalorder %s828_s3, %s642_s10  ;;  %p646_p11 = scmp.lt.u32.totalorder %s642_s10, %s828_s3 }
  0x38   :  { %p648_p12 = pnand %p646_p11, %p643_p10 }
  0x3a   :  { %651 = shalt.err (!%p648_p12)
}
  0x3b   :  { %s652_s15 = scalar_lea.vmem %s768_s22, 2048  ;;  %p657_p0 = scmp.lt.s32.totalorder %s768_s22, %s768_s22 }
  0x3c   :  { %p653_p13 = scmp.ne.s32.totalorder %s768_s22, %s652_s15  ;;  %p658_p1 = scmp.lt.s32.totalorder %s652_s15, %s652_s15 }
  0x3e   :  { %p659_p2 = por %p658_p1, %p657_p0 }
  0x40   :  { %p660_p3 = pnand %p659_p2, %p653_p13 }
  0x42   :  { %663 = shalt.err (!%p660_p3)
}
  0x43   :  { %61 = dma.hbm_to_vmem [thread:$0]  %s828_s3, 2048, %s768_s22, [#allocation9], %s696_s30, %s696_s30, %s697_s6  }
  0x44   :  { %686 = dma.done.wait [#allocation3], 256  }
  0x45   :  { %687 = vsyncadd [#allocation3], 4294967040 }
  0x46   :  { %688 = dma.done.wait [#allocation6], 2304  }
  0x47   :  { %689 = vsyncadd [#allocation6], 4294964992 }
  0x48   :  { %690 = dma.done.wait [#allocation9], 2048  }
  0x49   :  { %691 = vsyncadd [#allocation9], 4294965248  ;;  %vm85_vm0 = vcmask 130048   ;;  %v79_v0 = vld [vmem:[#allocation5] sm:$0xff]  ;;  %v80_v1 = vld [vmem:[#allocation5 + $0x8] sm:$0xff]  ;;  %v81_v50 = vlaneseq }
  0x4a   :  { %v76_v2 = vld [vmem:[#allocation2] sm:$0xff]  ;;  %v501_v3 = vpack.c.bf16 %v80_v1, %v79_v0  ;;  %v170_v5 = vld [vmem:[#allocation7 + $0x8] sm:$0xff]  ;;  %v171_v7 = vld [vmem:[#allocation7 + $0x10] sm:$0xff] }
  0x4b   :  { %428 = vmatprep.mubr.msk.f32.mxu0 %vm85_vm0, %v76_v2  ;;  %v169_v4 = vld [vmem:[#allocation7] sm:$0xff]  ;;  %v172_v8 = vld [vmem:[#allocation7 + $0x18] sm:$0xff]  ;;  %v174_v11 = vld [vmem:[#allocation7 + $0x28] sm:$0xff]  ;;  %v82_v51 = vshrl.u32 %v81_v50, 7 }
  0x4c   :  { %v505_v6 = vpack.c.bf16 %v170_v5, %v169_v4  ;;  %502 = vmatprep.subr.bf16.mxu0 %v501_v3  ;;  %v509_v9 = vpack.c.bf16 %v172_v8, %v171_v7  ;;  %v173_v10 = vld [vmem:[#allocation7 + $0x20] sm:$0xff]  ;;  %v77_v12 = vld [vmem:[#allocation2 + $0x8] sm:$0xff]  ;;  %v175_v14 = vld [vmem:[#allocation7 + $0x30] sm:$0xff] }
  0x4d   :  { %504 = vmatpush3.bf16.msra.mxu0 %v501_v3  ;;  %v513_v13 = vpack.c.bf16 %v174_v11, %v173_v10  ;;  %v176_v15 = vld [vmem:[#allocation7 + $0x38] sm:$0xff]  ;;  %v177_v17 = vld [vmem:[#allocation7 + $0x40] sm:$0xff]  ;;  %v178_v18 = vld [vmem:[#allocation7 + $0x48] sm:$0xff]  ;;  %v83_v52 = vsub.s32 0, %v82_v51  ;;  %v187_v0 = vsub.s32 1, %v82_v51  ;;  %v284_v8 = vsub.s32 2, %v82_v51 }
  0x4e   :  { %506 = vmatprep.subr.bf16.mxu1 %v505_v6  ;;  %v517_v16 = vpack.c.bf16 %v176_v15, %v175_v14  ;;  %v521_v19 = vpack.c.bf16 %v178_v18, %v177_v17  ;;  %v179_v20 = vld [vmem:[#allocation7 + $0x50] sm:$0xff]  ;;  %v180_v21 = vld [vmem:[#allocation7 + $0x58] sm:$0xff]  ;;  %v181_v23 = vld [vmem:[#allocation7 + $0x60] sm:$0xff] }
  0x4f   :  { %508 = vmatpush3.bf16.msra.mxu1 %v505_v6  ;;  %v525_v22 = vpack.c.bf16 %v180_v21, %v179_v20  ;;  %v182_v24 = vld [vmem:[#allocation7 + $0x68] sm:$0xff]  ;;  %v183_v26 = vld [vmem:[#allocation7 + $0x70] sm:$0xff]  ;;  %v184_v27 = vld [vmem:[#allocation7 + $0x78] sm:$0xff] }
  0x50   :  { %510 = vmatprep.subr.bf16.mxu1 %v509_v9  ;;  %429 = vmatmul.mubr.msk.f32.vlgmr.msra.gmra.mrb[0].mxu0 %vm85_vm0, %v77_v12  ;;  %v529_v25 = vpack.c.bf16 %v182_v24, %v181_v23  ;;  %v533_v28 = vpack.c.bf16 %v184_v27, %v183_v26  ;;  %v266_v29 = vld [vmem:[#allocation8] sm:$0xff]  ;;  %v267_v30 = vld [vmem:[#allocation8 + $0x8] sm:$0xff]  ;;  %v268_v31 = vld [vmem:[#allocation8 + $0x10] sm:$0xff] }
  0x51   :  { %v537_v32 = vpack.c.bf16 %v267_v30, %v266_v29  ;;  %v269_v33 = vld [vmem:[#allocation8 + $0x18] sm:$0xff]  ;;  %v270_v35 = vld [vmem:[#allocation8 + $0x20] sm:$0xff]  ;;  %v271_v36 = vld [vmem:[#allocation8 + $0x28] sm:$0xff] }
  0x52   :  { %v541_v34 = vpack.c.bf16 %v269_v33, %v268_v31  ;;  %v545_v37 = vpack.c.bf16 %v271_v36, %v270_v35  ;;  %v272_v38 = vld [vmem:[#allocation8 + $0x30] sm:$0xff]  ;;  %v273_v39 = vld [vmem:[#allocation8 + $0x38] sm:$0xff]  ;;  %v274_v41 = vld [vmem:[#allocation8 + $0x40] sm:$0xff] }
  0x53   :  { %512 = vmatpush3.bf16.msra.mxu1 %v509_v9  ;;  %538 = vmatprep.subr.bf16.mxu0 %v537_v32  ;;  %v549_v40 = vpack.c.bf16 %v273_v39, %v272_v38  ;;  %v275_v42 = vld [vmem:[#allocation8 + $0x48] sm:$0xff]  ;;  %v276_v44 = vld [vmem:[#allocation8 + $0x50] sm:$0xff]  ;;  %v277_v45 = vld [vmem:[#allocation8 + $0x58] sm:$0xff] }
  0x54   :  { %514 = vmatprep.subr.bf16.mxu1 %v513_v13  ;;  %540 = vmatpush3.bf16.msra.mxu0 %v537_v32  ;;  %v553_v43 = vpack.c.bf16 %v275_v42, %v274_v41  ;;  %v557_v46 = vpack.c.bf16 %v277_v45, %v276_v44  ;;  %v278_v47 = vld [vmem:[#allocation8 + $0x60] sm:$0xff]  ;;  %v279_v48 = vld [vmem:[#allocation8 + $0x68] sm:$0xff]  ;;  %v280_v61 = vld [vmem:[#allocation8 + $0x70] sm:$0xff] }
  0x55   :  { %542 = vmatprep.subr.bf16.mxu0 %v541_v34  ;;  %v561_v49 = vpack.c.bf16 %v279_v48, %v278_v47  ;;  %v78_v53 = vld [vmem:[%s829_s4] sm:$0xff]  ;;  %v281_v62 = vld [vmem:[#allocation8 + $0x78] sm:$0xff]  ;;  %s700_s4 = smov [#allocation10]  }
  0x56   :  { %v84_v54 = vrot.slane %v78_v53, %v83_v52  ;;  %v565_v63 = vpack.c.bf16 %v281_v62, %v280_v61  ;;  %v188_v1 = vrot.slane %v78_v53, %v187_v0  ;;  %v285_v9 = vrot.slane %v78_v53, %v284_v8  ;;  %s368_s17 = sshll.u32 %s700_s4, 4  ;;  %s369_s17 = int_to_ptr.vmem [resolvable:$true] %s368_s17 }
  0x57   :  { %516 = vmatpush3.bf16.msra.mxu1 %v513_v13  ;;  %s664_s18 = scalar_lea.vmem %s369_s17, 256  ;;  %p669_p5 = scmp.lt.s32.totalorder %s369_s17, %s369_s17 }
  0x58   :  { %518 = vmatprep.subr.bf16.mxu1 %v517_v16  ;;  %544 = vmatpush3.bf16.msra.mxu0 %v541_v34  ;;  %p665_p4 = scmp.ne.s32.totalorder %s369_s17, %s664_s18  ;;  %p670_p6 = scmp.lt.s32.totalorder %s664_s18, %s664_s18 }
  0x59   :  { %546 = vmatprep.subr.bf16.mxu0 %v545_v37 }
  0x5a   :  { %p671_p7 = por %p670_p6, %p669_p5 }
  0x5b   :  { %520 = vmatpush3.bf16.msra.mxu1 %v517_v16 }
  0x5c   :  { %522 = vmatprep.subr.bf16.mxu1 %v521_v19  ;;  %548 = vmatpush3.bf16.msra.mxu0 %v545_v37  ;;  %p672_p8 = pnand %p671_p7, %p665_p4 }
  0x5d   :  { %550 = vmatprep.subr.bf16.mxu0 %v549_v40 }
  0x5f   :  { %524 = vmatpush3.bf16.msra.mxu1 %v521_v19 }
  0x60   :  { %526 = vmatprep.subr.bf16.mxu1 %v525_v22  ;;  %552 = vmatpush3.bf16.msra.mxu0 %v549_v40 }
  0x61   :  { %554 = vmatprep.subr.bf16.mxu0 %v553_v43 }
  0x63   :  { %528 = vmatpush3.bf16.msra.mxu1 %v525_v22 }
  0x64   :  { %530 = vmatprep.subr.bf16.mxu1 %v529_v25  ;;  %556 = vmatpush3.bf16.msra.mxu0 %v553_v43 }
  0x65   :  { %558 = vmatprep.subr.bf16.mxu0 %v557_v46 }
  0x67   :  { %532 = vmatpush3.bf16.msra.mxu1 %v529_v25 }
  0x68   :  { %534 = vmatprep.subr.bf16.mxu1 %v533_v28  ;;  %560 = vmatpush3.bf16.msra.mxu0 %v557_v46 }
  0x69   :  { %562 = vmatprep.subr.bf16.mxu0 %v561_v49 }
  0x6b   :  { %536 = vmatpush3.bf16.msra.mxu1 %v533_v28 }
  0x6c   :  { %564 = vmatpush3.bf16.msra.mxu0 %v561_v49 }
  0x6d   :  { %566 = vmatprep.subr.bf16.mxu0 %v565_v63 }
  0x70   :  { %568 = vmatpush3.bf16.msra.mxu0 %v565_v63 }
 0x123   :  { %v430_v55 = vpop.f32.mrb[0].mxu0 }
 0x124   :  { %v164_v56 = vadd.f32 %v430_v55, %v84_v54  ;;  %v158_v57 = vpop.f32.mrb[1].mxu0 }
 0x125   :  { %v159_v58 = vadd.f32 %v158_v57, %v84_v54 }
 0x126   :  { %v168_v60 = vmax.f32 %v164_v56, 0.0 }
 0x127   :  { %v167_v59 = vmax.f32 %v159_v58, 0.0 }
 0x129   :  { %463 = vmatprep.mubr.f32.mxu1 %v167_v59 }
 0x12a   :  { %464 = vmatmul.mubr.f32.vlgmr.msra.gmra.mrb[0].mxu1 %v168_v60 }
 0x1fd   :  { %v465_v2 = vpop.f32.mrb[0].mxu1 }
 0x1fe   :  { %v261_v3 = vadd.f32 %v465_v2, %v188_v1  ;;  %v255_v4 = vpop.f32.mrb[1].mxu1 }
 0x1ff   :  { %v256_v5 = vadd.f32 %v255_v4, %v188_v1 }
 0x200   :  { %v265_v7 = vmax.f32 %v261_v3, 0.0 }
 0x201   :  { %v264_v6 = vmax.f32 %v256_v5, 0.0 }
 0x203   :  { %498 = vmatprep.mubr.f32.mxu0 %v264_v6 }
 0x204   :  { %499 = vmatmul.mubr.f32.vlgmr.msra.gmra.mrb[2].mxu0 %v265_v7 }
 0x2d7   :  { %v500_v10 = vpop.f32.mrb[2].mxu0 }
 0x2d8   :  { %v358_v11 = vadd.f32 %v500_v10, %v285_v9  ;;  %v352_v12 = vpop.f32.mrb[3].mxu0 }
 0x2d9   :  { %v353_v13 = vadd.f32 %v352_v12, %v285_v9 }
 0x2da   :  { %362 = vst [vmem:[#allocation10 + $0x8] sm:$0xff] %v358_v11 }
 0x2db   :  { %361 = vst [vmem:[#allocation10] sm:$0xff] %v353_v13 }
 0x2dc   :  { %675 = shalt.err (!%p672_p8)
}
 0x2dd   :  { %s676_s22 = scalar_lea.hbm %s830_s5, 256 }
 0x2de   :  { %p677_p9 = scmp.ne.s32.totalorder %s830_s5, %s676_s22  ;;  %p680_p10 = scmp.lt.u32.totalorder %s676_s22, %s830_s5 }
 0x2e0   :  { %p682_p11 = pnand %p680_p10, %p677_p9 }
 0x2e2   :  { %685 = shalt.err (!%p682_p11)
}
 0x2e3   :  { %374 = dma.vmem_to_hbm [thread:$0]  %s369_s17, 256, %s830_s5, [#allocation4], %s696_s30, %s696_s30, %s697_s6  }
 0x2e4   :  { %692 = dma.done.wait [#allocation4], 256  }
 0x2e5   :  { %693 = vsyncadd [#allocation4], 4294967040 }
 0x2e6   :  { %378 = vsyncpa [#allocation3], 1 }
 0x2e7   :  { %379 = vsyncpa [#allocation6], 1 }
 0x2e8   :  { %380 = vsyncpa [#allocation9], 1 }
 0x2e9   :  { %381 = vsyncpa [#allocation4], 1 }

</bundles_post_ra>
